<compile_context>
chip_gen: v7x
topology: tpu7x:2x2x1
jax: 0.10.0
libtpu: 0.0.40
codegen_flags: <defaults>
</compile_context>

<pallas_src>
import jax
import jax.numpy as jnp
from jax.experimental import pallas as pl
from jax.experimental.pallas import tpu as pltpu


INPUT_DIM = 12
HIDDEN_DIMS = [32, 32]
OUTPUT_DIM = 11


def _round_up(x, m):
    return ((x + m - 1) // m) * m


def mlp_kernel(x_ref, w0_ref, b0_ref, w1_ref, b1_ref, w2_ref, b2_ref, o_ref):
    """One batch tile through the full MLP.

    MXU operands use the weights' (compute) dtype; accumulation and the
    bias/ReLU elementwise math stay f32 (v5e has no bf16 VPU datapath).
    """
    cdt = w0_ref.dtype

    # Layer 0: Linear + ReLU
    h = jnp.dot(x_ref[...].astype(cdt), w0_ref[...],
                preferred_element_type=jnp.float32)
    h = jnp.maximum(h + b0_ref[...], 0.0)

    # Layer 1: Linear + ReLU
    h = jnp.dot(h.astype(cdt), w1_ref[...],
                preferred_element_type=jnp.float32)
    h = jnp.maximum(h + b1_ref[...], 0.0)

    # Layer 2 (final): Linear, no activation — store straight to the 11-wide
    # lane-masked output block (HBM destination stays fully contiguous).
    h = jnp.dot(h.astype(cdt), w2_ref[...],
                preferred_element_type=jnp.float32)
    h = h + b2_ref[...]

    o_ref[...] = h.astype(o_ref.dtype)


def _choose_tile_b(batch, desired):
    """Pick a batch-tile size: multiple of 8, large (mem-bound roofline),
    but capped so the grid has >= 2 steps whenever the batch allows it
    (v7x megacore sharding + pipelining)."""
    desired = max(8, int(desired))
    if batch <= 8:
        return batch                      # single full-extent block (legal)
    cap = _round_up(pl.cdiv(batch, 2), 8)  # guarantees num_tiles >= 2
    return max(8, min(_round_up(desired, 8), cap))


def dnn_forward(x, params, *, tile_b=1024, compute_dtype=None,
                out_dtype=jnp.float32):
    """x: (batch, INPUT_DIM); params: list of (W, b) with W shaped (in, out).

    compute_dtype: dtype fed to the MXU (None -> x.dtype; or jnp.bfloat16).
    out_dtype:     dtype of the stored result (f32 default, bf16 optional).
    Accumulation / bias / ReLU stay f32 regardless.
    """
    (w0, b0), (w1, b1), (w2, b2) = params
    batch = x.shape[0]
    in_dim = w0.shape[0]
    h0 = w0.shape[1]
    h1 = w1.shape[1]
    out_dim = w2.shape[1]

    if compute_dtype is None:
        compute_dtype = x.dtype

    # Batch tiling: partial trailing tile is handled by Pallas (no jnp.pad).
    tb = _choose_tile_b(batch, tile_b)
    num_tiles = pl.cdiv(batch, tb)

    # Weights are tiny (~5 KB); casting them in the wrapper is negligible.
    # x is NOT cast in the wrapper (would cost an extra HBM pass).
    w0c = w0.astype(compute_dtype)
    w1c = w1.astype(compute_dtype)
    w2c = w2.astype(compute_dtype)
    # Biases kept f32 and 2D (1, out) so they broadcast over batch rows.
    b0r = b0.reshape(1, -1).astype(jnp.float32)
    b1r = b1.reshape(1, -1).astype(jnp.float32)
    b2r = b2.reshape(1, -1).astype(jnp.float32)

    x_isz = jnp.dtype(x.dtype).itemsize
    c_isz = jnp.dtype(compute_dtype).itemsize
    o_isz = jnp.dtype(out_dtype).itemsize
    flops = 2 * batch * (in_dim * h0 + h0 * h1 + h1 * out_dim)
    bytes_accessed = (
        batch * in_dim * x_isz                               # x in
        + batch * out_dim * o_isz                            # out
        + (in_dim * h0 + h0 * h1 + h1 * out_dim) * c_isz     # weights
        + (h0 + h1 + out_dim) * 4                            # biases (f32)
    )

    full = lambda i: (0, 0)  # weights / biases: same full block every tile

    out = pl.pallas_call(
        mlp_kernel,
        out_shape=jax.ShapeDtypeStruct((batch, out_dim), out_dtype),
        grid=(num_tiles,),
        in_specs=[
            pl.BlockSpec((tb, in_dim), lambda i: (i, 0)),  # x tile
            pl.BlockSpec((in_dim, h0), full),              # w0
            pl.BlockSpec((1, h0), full),                   # b0
            pl.BlockSpec((h0, h1), full),                  # w1
            pl.BlockSpec((1, h1), full),                   # b1
            pl.BlockSpec((h1, out_dim), full),             # w2
            pl.BlockSpec((1, out_dim), full),              # b2
        ],
        out_specs=pl.BlockSpec((tb, out_dim), lambda i: (i, 0)),
        compiler_params=pltpu.CompilerParams(
            dimension_semantics=("parallel",)),
        cost_estimate=pl.CostEstimate(
            flops=int(flops), transcendentals=0,
            bytes_accessed=int(bytes_accessed)),
    )(x, w0c, b0r, w1c, b1r, w2c, b2r)

    return out


def init_params(key):
    """Deterministic init mimicking nn.Linear's uniform(-1/sqrt(fan_in), ...)."""
    dims = [INPUT_DIM] + HIDDEN_DIMS + [OUTPUT_DIM]
    params = []
    for i in range(1, len(dims)):
        fan_in, fan_out = dims[i - 1], dims[i]
        key, kw, kb = jax.random.split(key, 3)
        bound = 1.0 / jnp.sqrt(fan_in)
        # Stored as (in, out); equivalent to torch's (out, in) weight transposed.
        w = jax.random.uniform(kw, (fan_in, fan_out), jnp.float32, -bound, bound)
        b = jax.random.uniform(kb, (fan_out,), jnp.float32, -bound, bound)
        params.append((w, b))
    return params


def reference_forward(x, params):
    """Plain-JAX reference of the same MLP (for correctness checks)."""
    (w0, b0), (w1, b1), (w2, b2) = params
    h = jnp.maximum(x @ w0 + b0, 0.0)
    h = jnp.maximum(h @ w1 + b1, 0.0)
    return h @ w2 + b2


if __name__ == "__main__":
    key = jax.random.PRNGKey(0)
    key, kx = jax.random.split(key)

    # Small shape consistent with the module spec.
    batch = 8
    x = jax.random.normal(kx, (batch, INPUT_DIM), jnp.float32)
    params = init_params(key)

    out = jax.block_until_ready(dnn_forward(x, params))
    ref = reference_forward(x, params)
    assert out.shape == (batch, OUTPUT_DIM)
    assert jnp.allclose(out, ref, atol=1e-5, rtol=1e-5)

    # Larger, non-divisible batch: exercises the >=2-tile grid and the
    # partial trailing tile (no jnp.pad / no wrapper slice).
    key, kx2 = jax.random.split(key)
    batch2 = 1000
    x2 = jax.random.normal(kx2, (batch2, INPUT_DIM), jnp.float32)
    out2 = jax.block_until_ready(dnn_forward(x2, params, tile_b=1024))
    ref2 = reference_forward(x2, params)
    assert out2.shape == (batch2, OUTPUT_DIM)
    assert jnp.allclose(out2, ref2, atol=1e-5, rtol=1e-5)

    # bf16 MXU-input path (halves weight traffic; x cast happens in-kernel),
    # f32 accumulation, so only modest precision loss vs the f32 reference.
    out_bf16 = jax.block_until_ready(
        dnn_forward(x2, params, tile_b=1024, compute_dtype=jnp.bfloat16))
    assert jnp.allclose(out_bf16, ref2, atol=5e-2, rtol=5e-2)

    # bf16 output path (halves the dominant output HBM stream).
    out_bf16o = jax.block_until_ready(
        dnn_forward(x2, params, tile_b=1024, out_dtype=jnp.bfloat16))
    assert out_bf16o.dtype == jnp.bfloat16
    assert jnp.allclose(out_bf16o.astype(jnp.float32), ref2,
                        atol=5e-2, rtol=5e-2)

    print("KERNEL_OK")
</pallas_src>

<mosaic_0001>
module attributes {stable_mosaic.version = 11 : i64} {
  func.func @mlp_kernel(%arg0: i32, %arg1: memref<8x12xf32, #tpu.memory_space<vmem>>, %arg2: memref<12x32xf32, #tpu.memory_space<vmem>>, %arg3: memref<1x32xf32, #tpu.memory_space<vmem>>, %arg4: memref<32x32xf32, #tpu.memory_space<vmem>>, %arg5: memref<1x32xf32, #tpu.memory_space<vmem>>, %arg6: memref<32x11xf32, #tpu.memory_space<vmem>>, %arg7: memref<1x11xf32, #tpu.memory_space<vmem>>, %arg8: memref<8x11xf32, #tpu.memory_space<vmem>>) attributes {dimension_semantics = [#tpu.dimension_semantics<parallel>], iteration_bounds = array<i64: 1>, scalar_prefetch = 0 : i64, scratch_operands = 0 : i64, tpu.core_type = #tpu.core_type<tc>, window_params = [{transform_indices = @transform_0, window_bounds = array<i64: 8, 12>}, {pipeline_mode = #tpu.pipeline_mode<synchronous>, transform_indices = @transform_1, window_bounds = array<i64: 12, 32>}, {pipeline_mode = #tpu.pipeline_mode<synchronous>, transform_indices = @transform_2, window_bounds = array<i64: 1, 32>}, {pipeline_mode = #tpu.pipeline_mode<synchronous>, transform_indices = @transform_3, window_bounds = array<i64: 32, 32>}, {pipeline_mode = #tpu.pipeline_mode<synchronous>, transform_indices = @transform_4, window_bounds = array<i64: 1, 32>}, {pipeline_mode = #tpu.pipeline_mode<synchronous>, transform_indices = @transform_5, window_bounds = array<i64: 32, 11>}, {pipeline_mode = #tpu.pipeline_mode<synchronous>, transform_indices = @transform_6, window_bounds = array<i64: 1, 11>}, {transform_indices = @transform_7, window_bounds = array<i64: 8, 11>}]} {
    %c0 = arith.constant 0 : index
    %c0_0 = arith.constant 0 : index
    %0 = vector.load %arg1[%c0, %c0_0] : memref<8x12xf32, #tpu.memory_space<vmem>>, vector<8x12xf32>
    %c0_1 = arith.constant 0 : index
    %c0_2 = arith.constant 0 : index
    %1 = vector.load %arg2[%c0_1, %c0_2] : memref<12x32xf32, #tpu.memory_space<vmem>>, vector<12x32xf32>
    %cst = arith.constant dense<0.000000e+00> : vector<8x32xf32>
    %2 = tpu.matmul %0, %1, %cst {dimension_numbers = #tpu.dot_dimension_numbers<[1], [0], [0], [1], [0, 0, 1, 1], [], []>} : vector<8x12xf32>, vector<12x32xf32>, vector<8x32xf32> -> vector<8x32xf32>
    %c0_3 = arith.constant 0 : index
    %c0_4 = arith.constant 0 : index
    %3 = vector.load %arg3[%c0_3, %c0_4] : memref<1x32xf32, #tpu.memory_space<vmem>>, vector<1x32xf32>
    %4 = vector.broadcast %3 : vector<1x32xf32> to vector<8x32xf32>
    %5 = arith.addf %2, %4 : vector<8x32xf32>
    %cst_5 = arith.constant 0.000000e+00 : f32
    %6 = vector.broadcast %cst_5 : f32 to vector<8x32xf32>
    %7 = arith.maximumf %5, %6 : vector<8x32xf32>
    %c0_6 = arith.constant 0 : index
    %c0_7 = arith.constant 0 : index
    %8 = vector.load %arg4[%c0_6, %c0_7] : memref<32x32xf32, #tpu.memory_space<vmem>>, vector<32x32xf32>
    %cst_8 = arith.constant dense<0.000000e+00> : vector<8x32xf32>
    %9 = tpu.matmul %7, %8, %cst_8 {dimension_numbers = #tpu.dot_dimension_numbers<[1], [0], [0], [1], [0, 0, 1, 1], [], []>} : vector<8x32xf32>, vector<32x32xf32>, vector<8x32xf32> -> vector<8x32xf32>
    %c0_9 = arith.constant 0 : index
    %c0_10 = arith.constant 0 : index
    %10 = vector.load %arg5[%c0_9, %c0_10] : memref<1x32xf32, #tpu.memory_space<vmem>>, vector<1x32xf32>
    %11 = vector.broadcast %10 : vector<1x32xf32> to vector<8x32xf32>
    %12 = arith.addf %9, %11 : vector<8x32xf32>
    %cst_11 = arith.constant 0.000000e+00 : f32
    %13 = vector.broadcast %cst_11 : f32 to vector<8x32xf32>
    %14 = arith.maximumf %12, %13 : vector<8x32xf32>
    %c0_12 = arith.constant 0 : index
    %c0_13 = arith.constant 0 : index
    %15 = vector.load %arg6[%c0_12, %c0_13] : memref<32x11xf32, #tpu.memory_space<vmem>>, vector<32x11xf32>
    %cst_14 = arith.constant dense<0.000000e+00> : vector<8x11xf32>
    %16 = tpu.matmul %14, %15, %cst_14 {dimension_numbers = #tpu.dot_dimension_numbers<[1], [0], [0], [1], [0, 0, 1, 1], [], []>} : vector<8x32xf32>, vector<32x11xf32>, vector<8x11xf32> -> vector<8x11xf32>
    %c0_15 = arith.constant 0 : index
    %c0_16 = arith.constant 0 : index
    %17 = vector.load %arg7[%c0_15, %c0_16] : memref<1x11xf32, #tpu.memory_space<vmem>>, vector<1x11xf32>
    %18 = vector.broadcast %17 : vector<1x11xf32> to vector<8x11xf32>
    %19 = arith.addf %16, %18 : vector<8x11xf32>
    %c0_17 = arith.constant 0 : index
    %c0_18 = arith.constant 0 : index
    %20 = vector.load %arg8[%c0_17, %c0_18] : memref<8x11xf32, #tpu.memory_space<vmem>>, vector<8x11xf32>
    tpu.vector_store %arg8[%c0_17, %c0_18], %19 {strides = array<i32>} : memref<8x11xf32, #tpu.memory_space<vmem>>, vector<8x11xf32>,
    return
  }
  func.func @transform_0(%arg0: i32) -> (i32, i32) {
    %c0_i32 = arith.constant 0 : i32
    %c0_i32_0 = arith.constant 0 : i32
    return %arg0, %c0_i32 : i32, i32
  }
  func.func @transform_1(%arg0: i32) -> (i32, i32) {
    %c0_i32 = arith.constant 0 : i32
    %c0_i32_0 = arith.constant 0 : i32
    %c0_i32_1 = arith.constant 0 : i32
    return %c0_i32, %c0_i32_0 : i32, i32
  }
  func.func @transform_2(%arg0: i32) -> (i32, i32) {
    %c0_i32 = arith.constant 0 : i32
    %c0_i32_0 = arith.constant 0 : i32
    %c0_i32_1 = arith.constant 0 : i32
    return %c0_i32, %c0_i32_0 : i32, i32
  }
  func.func @transform_3(%arg0: i32) -> (i32, i32) {
    %c0_i32 = arith.constant 0 : i32
    %c0_i32_0 = arith.constant 0 : i32
    %c0_i32_1 = arith.constant 0 : i32
    return %c0_i32, %c0_i32_0 : i32, i32
  }
  func.func @transform_4(%arg0: i32) -> (i32, i32) {
    %c0_i32 = arith.constant 0 : i32
    %c0_i32_0 = arith.constant 0 : i32
    %c0_i32_1 = arith.constant 0 : i32
    return %c0_i32, %c0_i32_0 : i32, i32
  }
  func.func @transform_5(%arg0: i32) -> (i32, i32) {
    %c0_i32 = arith.constant 0 : i32
    %c0_i32_0 = arith.constant 0 : i32
    %c0_i32_1 = arith.constant 0 : i32
    return %c0_i32, %c0_i32_0 : i32, i32
  }
  func.func @transform_6(%arg0: i32) -> (i32, i32) {
    %c0_i32 = arith.constant 0 : i32
    %c0_i32_0 = arith.constant 0 : i32
    %c0_i32_1 = arith.constant 0 : i32
    return %c0_i32, %c0_i32_0 : i32, i32
  }
  func.func @transform_7(%arg0: i32) -> (i32, i32) {
    %c0_i32 = arith.constant 0 : i32
    %c0_i32_0 = arith.constant 0 : i32
    return %arg0, %c0_i32 : i32, i32
  }
}

</mosaic_0001>

<bundles_post_ra>
// kernel: tpu_custom_call.1
= control target key start
LH: loop header
LB: loop body
LE: loop exit
PB: predicated region body
PF: predicated region fallthrough
CT: control target
= control target key end

     0   :  { %12 = vsyncpa [#allocation3], 0  ;;  %s546_s0 = inlined_call_operand.hbm [shape: f32[8,12], index: 0, kind: input, shape index: {}]   ;;  %s547_s1 = inlined_call_operand.vmem [shape: f32[12,32], index: 1, kind: input, shape index: {}]   ;;  %s548_s2 = inlined_call_operand.vmem [shape: f32[1,32], index: 2, kind: input, shape index: {}]   ;;  %s549_s3 = inlined_call_operand.vmem [shape: f32[32,32], index: 3, kind: input, shape index: {}]   ;;  %s550_s4 = inlined_call_operand.vmem [shape: f32[1,32], index: 4, kind: input, shape index: {}]   ;;  %s551_s5 = inlined_call_operand.vmem [shape: f32[32,11], index: 5, kind: input, shape index: {}]   ;;  %s552_s6 = inlined_call_operand.vmem [shape: f32[1,11], index: 6, kind: input, shape index: {}]   ;;  %s553_s7 = inlined_call_operand.hbm [shape: f32[8,11], index: 7, kind: output, shape index: {}]  }
   0x1   :  { %13 = vsyncpa [#allocation4], 0  ;;  %s434_s24 = smov [#allocation2]   ;;  %s386_s28 = scalar_lea.hbm %s546_s0, 128 }
   0x2   :  { %s20_s25 = sshll.u32 %s434_s24, 4  ;;  %p387_p0 = scmp.ne.s32.totalorder %s546_s0, %s386_s28  ;;  %s21_s25 = int_to_ptr.vmem [resolvable:$true] %s20_s25 }
   0x3   :  { %p390_p1 = scmp.lt.u32.totalorder %s386_s28, %s546_s0 }
   0x5   :  { %p392_p2 = pnand %p390_p1, %p387_p0 }
   0x7   :  { %395 = shalt.err (!%p392_p2)
}
   0x8   :  { %s396_s10 = scalar_lea.vmem %s21_s25, 128  ;;  %p401_p4 = scmp.lt.s32.totalorder %s21_s25, %s21_s25 }
   0x9   :  { %p397_p3 = scmp.ne.s32.totalorder %s21_s25, %s396_s10  ;;  %p402_p5 = scmp.lt.s32.totalorder %s396_s10, %s396_s10 }
   0xb   :  { %p403_p6 = por %p402_p5, %p401_p4 }
   0xd   :  { %p404_p7 = pnand %p403_p6, %p397_p3 }
   0xf   :  { %407 = shalt.err (!%p404_p7)
}
  0x10   :  { %23 = dma.hbm_to_vmem [thread:$0]  %s546_s0, 128, %s21_s25, [#allocation3]  }
  0x11   :  { %430 = dma.done.wait [#allocation3], 128  }
  0x12   :  { %431 = vsyncadd [#allocation3], 4294967168  ;;  %v435_v0 = vmov 0.0|0.0   ;;  %vm436_vm0 = vmmov 0   ;;  %v437_v1 = vmov 0.0   ;;  %vm53_vm1 = vcmask 1043456  }
  0x13   :  { %364 = vmatprep.subr.bf16.mxu0 %v435_v0  ;;  %368 = vmatprep.subr.bf16.mxu1 %v435_v0  ;;  %v40_v2 = vld [vmem:[%s547_s1] sm:$0xff]  ;;  %v41_v3 = vld [vmem:[%s547_s1 + $0x8] sm:$0xf]  ;;  %vm438_vm2 = vmmov 1   ;;  %vm49_vm4 = vcmask 97280   ;;  %v130_v9 = vld [vmem:[%s549_s3 + $0x10] sm:$0xff] }
  0x14   :  { %339 = vmatprep.mubr.msk.f32.mxu0 %vm436_vm0, %v437_v1  ;;  %350 = vmatprep.mubr.msk.f32.mxu1 %vm436_vm0, %v437_v1  ;;  %vm366_vm3 = vmpackc.low %vm53_vm1, %vm438_vm2  ;;  %v365_v4 = vpack.c.bf16 %v41_v3, %v40_v2  ;;  %v128_v5 = vld [vmem:[%s549_s3] sm:$0xff]  ;;  %v129_v6 = vld [vmem:[%s549_s3 + $0x8] sm:$0xff]  ;;  %vm139_vm5 = vcmask 261120   ;;  %s439_s12 = smov [#allocation5]   ;;  %vm298_vm6 = vcmask 89088  }
  0x15   :  { %v369_v7 = vpack.c.bf16 %v129_v6, %v128_v5  ;;  %v39_v8 = vld [vmem:[#allocation2] sm:$0xff]  ;;  %v131_v10 = vld [vmem:[%s549_s3 + $0x18] sm:$0xff]  ;;  %v215_v13 = vld [vmem:[%s551_s5 + $0x8] sm:$0xff]  ;;  %s306_s13 = sshll.u32 %s439_s12, 4  ;;  %s307_s13 = int_to_ptr.vmem [resolvable:$true] %s306_s13 }
  0x16   :  { %367 = vmatpush3.bf16.msk.msra.mxu0 %vm366_vm3, %v365_v4  ;;  %v372_v11 = vpack.c.bf16 %v131_v10, %v130_v9  ;;  %v214_v12 = vld [vmem:[%s551_s5] sm:$0xff]  ;;  %v216_v20 = vld [vmem:[%s551_s5 + $0x10] sm:$0xff]  ;;  %v217_v21 = vld [vmem:[%s551_s5 + $0x18] sm:$0xff]  ;;  %s408_s5 = scalar_lea.vmem %s307_s13, 128  ;;  %p413_p9 = scmp.lt.s32.totalorder %s307_s13, %s307_s13 }
  0x17   :  { %370 = vmatpush3.bf16.msra.mxu1 %v369_v7  ;;  %374 = vmatprep.subr.bf16.mxu0 %v435_v0  ;;  %v375_v14 = vpack.c.bf16 %v215_v13, %v214_v12  ;;  %v315_v15 = vld [vmem:[%s548_s2] ss:$0 sm:$0xff]  ;;  %v378_v22 = vpack.c.bf16 %v217_v21, %v216_v20  ;;  %p409_p8 = scmp.ne.s32.totalorder %s307_s13, %s408_s5  ;;  %p414_p10 = scmp.lt.s32.totalorder %s408_s5, %s408_s5 }
  0x18   :  { %371 = vmatprep.subr.bf16.mxu1 %v435_v0  ;;  %v318_v23 = vld [vmem:[%s550_s4] ss:$0 sm:$0xff] }
  0x19   :  { %340 = vmatmul.mubr.msk.f32.vlgmr.msra.gmra.mrb[0].mxu0 %vm49_vm4, %v39_v8  ;;  %v320_v28 = vld [vmem:[%s552_s6] ss:$0 sm:$0xff]  ;;  %p415_p11 = por %p414_p10, %p413_p9 }
  0x1a   :  { %361 = vmatprep.mubr.msk.f32.mxu0 %vm436_vm0, %v437_v1  ;;  %376 = vmatpush3.bf16.msra.mxu0 %v375_v14 }
  0x1b   :  { %373 = vmatpush3.bf16.msra.mxu1 %v372_v11  ;;  %377 = vmatprep.subr.bf16.mxu0 %v435_v0  ;;  %p416_p12 = pnand %p415_p11, %p409_p8 }
  0x1e   :  { %379 = vmatpush3.bf16.msra.mxu0 %v378_v22 }
  0xec   :  { %v123_v16 = vpop.f32.mrb[0].mxu0 }
  0xed   :  { %v124_v17 = vadd.f32 %v315_v15, %v123_v16  ;;  %v341_v18 = vpop.f32.mrb[1].mxu0 }
  0xef   :  { %v127_v19 = vmax.f32 %v124_v17, 0.0 }
  0xf1   :  { %351 = vmatmul.mubr.msk.f32.vlgmr.msra.gmra.mrb[0].mxu1 %vm139_vm5, %v127_v19 }
 0x1c4   :  { %v209_v24 = vpop.f32.mrb[0].mxu1 }
 0x1c5   :  { %v210_v25 = vadd.f32 %v318_v23, %v209_v24  ;;  %v352_v26 = vpop.f32.mrb[1].mxu1 }
 0x1c7   :  { %v213_v27 = vmax.f32 %v210_v25, 0.0 }
 0x1c9   :  { %362 = vmatmul.mubr.msk.f32.vlgmr.msra.gmra.mrb[2].mxu0 %vm139_vm5, %v213_v27 }
 0x29c   :  { %v294_v29 = vpop.f32.mrb[2].mxu0 }
 0x29d   :  { %v295_v30 = vadd.f32 %v320_v28, %v294_v29  ;;  %v363_v31 = vpop.f32.mrb[3].mxu0 }
 0x29f   :  { %299 = vst.msk [vmem:[#allocation5] sm:$0xff] %vm298_vm6, %v295_v30 }
 0x2a0   :  { %419 = shalt.err (!%p416_p12)
}
 0x2a1   :  { %s420_s15 = scalar_lea.hbm %s553_s7, 128 }
 0x2a2   :  { %p421_p13 = scmp.ne.s32.totalorder %s553_s7, %s420_s15  ;;  %p424_p0 = scmp.lt.u32.totalorder %s420_s15, %s553_s7 }
 0x2a4   :  { %p426_p1 = pnand %p424_p0, %p421_p13 }
 0x2a6   :  { %429 = shalt.err (!%p426_p1)
}
 0x2a7   :  { %309 = dma.vmem_to_hbm [thread:$0]  %s307_s13, 128, %s553_s7, [#allocation4]  }
 0x2a8   :  { %432 = dma.done.wait [#allocation4], 128  }
 0x2a9   :  { %433 = vsyncadd [#allocation4], 4294967168 }
 0x2aa   :  { %313 = vsyncpa [#allocation3], 1 }
 0x2ab   :  { %314 = vsyncpa [#allocation4], 1 }

</bundles_post_ra>
